<compile_context>
chip_gen: v6e
topology: v6e:2x2x1
jax: 0.10.0
libtpu: 0.0.40
codegen_flags: <defaults>
</compile_context>

<pallas_src>
import functools

import numpy as np
import jax
import jax.numpy as jnp
from jax.experimental import pallas as pl
from jax.experimental.pallas import tpu as pltpu


_LEAKY_SLOPE = 0.01  # nn.LeakyReLU() default


def _leaky_relu(x, slope=_LEAKY_SLOPE):
    return jnp.where(x >= 0, x, slope * x)


def _round_up(x, m):
    return ((x + m - 1) // m) * m


# --------------------------------------------------------------------------- #
# Kernel: whole fused (mu_w || mu_b) MLP for one batch tile of z.
#   vec_ref  : (16, Hp)      rows = [a1, c1, r2, c2, r3, c3, c4, c5, c6, 0...]
#   mats_ref : (5, Hp, Hp)   stack  = [a2, a3, a4, a5, a6]
#   aout_ref : (Hp, Pp)      fused block-diagonal output head
#   cout_ref : (1, Pp)
# --------------------------------------------------------------------------- #
def _hyper_kernel(z_ref, vec_ref, mats_ref, aout_ref, cout_ref, out_ref):
    z = z_ref[...]
    x1 = z[:, 0:1]
    x2 = z[:, 1:2]
    x3 = z[:, 2:3]

    a1 = vec_ref[0:1, :]
    c1 = vec_ref[1:2, :]
    r2 = vec_ref[2:3, :]
    c2 = vec_ref[3:4, :]
    r3 = vec_ref[4:5, :]
    c3 = vec_ref[5:6, :]
    c4 = vec_ref[6:7, :]
    c5 = vec_ref[7:8, :]
    c6 = vec_ref[8:9, :]

    cdt = mats_ref.dtype  # matmul operand dtype (f32 or bf16); acc stays f32

    # Stage 1: (f2 . f1)(x1) folded to a rank-1 broadcast (pure VPU, no MXU).
    h = _leaky_relu(x1 * a1 + c1)
    # Stage 2: f4([h, f3(x2)]) -- f3 branch folded into a rank-1 term.
    h = _leaky_relu(jnp.dot(h.astype(cdt), mats_ref[0],
                            preferred_element_type=jnp.float32)
                    + x2 * r2 + c2)
    # Stage 3: f6([h, f5(x3)]).
    h = _leaky_relu(jnp.dot(h.astype(cdt), mats_ref[1],
                            preferred_element_type=jnp.float32)
                    + x3 * r3 + c3)
    # Stages 4-6: f7, f8, f9.
    h = _leaky_relu(jnp.dot(h.astype(cdt), mats_ref[2],
                            preferred_element_type=jnp.float32) + c4)
    h = _leaky_relu(jnp.dot(h.astype(cdt), mats_ref[3],
                            preferred_element_type=jnp.float32) + c5)
    h = _leaky_relu(jnp.dot(h.astype(cdt), mats_ref[4],
                            preferred_element_type=jnp.float32) + c6)
    # Fused output head: one lane-dense [mu_w | mu_b | zero-pad] slab.
    out_ref[...] = (jnp.dot(h.astype(cdt), aout_ref[...],
                            preferred_element_type=jnp.float32)
                    + cout_ref[...])


# --------------------------------------------------------------------------- #
# One-time parameter preparation (NOT in the per-forward path).
# --------------------------------------------------------------------------- #
def _fold_net(p, H):
    """Fold one HypernetWeight into per-stage fused matrices.

    Torch Linear(in, out): y = x @ W.T + b, W of shape (out, in).
    """
    a1 = (p["W2"] @ p["W1"]).T                                   # (1, H)
    c1 = (p["W2"] @ p["b1"] + p["b2"]).reshape(1, -1)
    w4a, w4b = p["W4"][:, :H], p["W4"][:, H:]                    # split concat([h, f3(x2)])
    r2 = (w4b @ p["W3"]).T
    c2 = (w4b @ p["b3"] + p["b4"]).reshape(1, -1)
    w6a, w6b = p["W6"][:, :H], p["W6"][:, H:]
    r3 = (w6b @ p["W5"]).T
    c3 = (w6b @ p["b5"] + p["b6"]).reshape(1, -1)
    return dict(
        a1=a1, c1=c1,
        a2=w4a.T, r2=r2, c2=c2,
        a3=w6a.T, r3=r3, c3=c3,
        a4=p["W7"].T, c4=p["b7"].reshape(1, -1),
        a5=p["W8"].T, c5=p["b8"].reshape(1, -1),
        a6=p["W9"].T, c6=p["b9"].reshape(1, -1),
        aout=p["Wout"].T, cout=p["bout"].reshape(1, -1),
    )


def _block_diag(a, b):
    m, n = a.shape
    p, q = b.shape
    out = jnp.zeros((m + p, n + q), a.dtype)
    return out.at[:m, :n].set(a).at[m:, n:].set(b)


def _fuse_two(fw, fb):
    """Pack the mu_w and mu_b networks into one network of hidden width 2H."""
    fused = {}
    for k in ("a1", "c1", "r2", "c2", "r3", "c3", "c4", "c5", "c6", "cout"):
        fused[k] = jnp.concatenate([fw[k], fb[k]], axis=1)
    for k in ("a2", "a3", "a4", "a5", "a6", "aout"):
        fused[k] = _block_diag(fw[k], fb[k])
    return fused


def prepare_fused_params(params_w, params_b, h_units, matmul_dtype=jnp.float32):
    """Fold + fuse + lane-pad + pack the two HypernetWeight heads.

    Returns (weights_dict, p_tot). Do this ONCE; reuse across forward calls.
    """
    H = h_units
    fused = _fuse_two(_fold_net(params_w, H), _fold_net(params_b, H))
    p_tot = fused["aout"].shape[1]
    Hp = _round_up(2 * H, 128)          # fused hidden width, padded to full lanes
    Pp = _round_up(p_tot, 128)          # lane-dense output width

    def pad2(a, rows, cols):
        return jnp.pad(a, ((0, rows - a.shape[0]), (0, cols - a.shape[1])))

    # (16, Hp) slab of row vectors (biases + rank-1 folded branches), f32.
    vec_rows = [fused[k] for k in
                ("a1", "c1", "r2", "c2", "r3", "c3", "c4", "c5", "c6")]
    vec = jnp.concatenate(vec_rows, axis=0)
    vec = pad2(vec, 16, Hp).astype(jnp.float32)

    # (5, Hp, Hp) stack of the square hidden matrices (matmul operand dtype).
    mats = jnp.stack([pad2(fused[k], Hp, Hp)
                      for k in ("a2", "a3", "a4", "a5", "a6")])
    mats = mats.astype(matmul_dtype)

    aout = pad2(fused["aout"], Hp, Pp).astype(matmul_dtype)
    cout = pad2(fused["cout"], 1, Pp).astype(jnp.float32)

    weights = dict(vec=jax.device_put(vec), mats=jax.device_put(mats),
                   aout=jax.device_put(aout), cout=jax.device_put(cout))
    return weights, p_tot


# --------------------------------------------------------------------------- #
# Forward wrapper (jitted; only pad -> pallas_call -> slice per call).
# --------------------------------------------------------------------------- #
def _pick_tile_k(K, Pp, vmem_budget_bytes=24 << 20):
    """Largest batch tile whose double-buffered f32 output tile fits the budget."""
    by_vmem = max(8, ((vmem_budget_bytes // (2 * 4 * max(Pp, 128))) // 8) * 8)
    tk = min(_round_up(K, 8), 1024, by_vmem)
    # Give v7x's two TensorCores >= 2 "parallel" grid steps for large batches.
    if K >= 512 and _round_up(K, 8) <= tk:
        tk = _round_up((K + 1) // 2, 8)
    return tk


@functools.partial(jax.jit, static_argnames=("p_tot",))
def single_hyper_network_forward(z, weights, *, p_tot):
    """Pallas forward of SingleHyperNetwork: mu = concat([mu_w, mu_b], -1)."""
    K, D = z.shape
    assert D >= 3, "forward uses z[:, 0:3]"
    Hp = weights["aout"].shape[0]
    Pp = weights["aout"].shape[1]

    TK = _pick_tile_k(K, Pp)
    K_pad = _round_up(K, TK)
    if K_pad != K:
        z = jnp.pad(z, ((0, K_pad - K), (0, 0)))
    grid = (K_pad // TK,)

    in_specs = [
        pl.BlockSpec((TK, D), lambda i: (i, 0)),          # z batch tile
        pl.BlockSpec((16, Hp), lambda i: (0, 0)),         # vec slab (resident)
        pl.BlockSpec((5, Hp, Hp), lambda i: (0, 0, 0)),   # a2..a6 stack (resident)
        pl.BlockSpec((Hp, Pp), lambda i: (0, 0)),         # aout (resident)
        pl.BlockSpec((1, Pp), lambda i: (0, 0)),          # cout (resident)
    ]
    out_specs = pl.BlockSpec((TK, Pp), lambda i: (i, 0))  # lane-dense output slab

    out = pl.pallas_call(
        _hyper_kernel,
        grid=grid,
        in_specs=in_specs,
        out_specs=out_specs,
        out_shape=jax.ShapeDtypeStruct((K_pad, Pp), jnp.float32),
        compiler_params=pltpu.CompilerParams(
            dimension_semantics=("parallel",)),
    )(z, weights["vec"], weights["mats"], weights["aout"], weights["cout"])

    return out[:K, :p_tot]


# --------------------------------------------------------------------------- #
# Pure-JAX reference (literal translation of HypernetWeight / SingleHyperNetwork)
# --------------------------------------------------------------------------- #
def _hypernet_weight_ref(x, p):
    act = _leaky_relu
    x1, x2, x3 = x[:, 0:1], x[:, 1:2], x[:, 2:3]
    w = x1 @ p["W1"].T + p["b1"]
    w = w @ p["W2"].T + p["b2"]
    w = act(w)
    w2 = x2 @ p["W3"].T + p["b3"]
    w = jnp.concatenate([w, w2], axis=-1)
    w = act(w @ p["W4"].T + p["b4"])
    w3 = x3 @ p["W5"].T + p["b5"]
    w = jnp.concatenate([w, w3], axis=-1)
    w = act(w @ p["W6"].T + p["b6"])
    w = act(w @ p["W7"].T + p["b7"])
    w = act(w @ p["W8"].T + p["b8"])
    w = act(w @ p["W9"].T + p["b9"])
    return w @ p["Wout"].T + p["bout"]


def reference_forward(z, params_w, params_b):
    mu_w = _hypernet_weight_ref(z, params_w)   # (K, out_units*in_units)
    mu_b = _hypernet_weight_ref(z, params_b)   # (K, out_units)
    return jnp.concatenate([mu_w, mu_b], axis=-1)


def _init_hypernet_params(key, h_units, out_dim, scale=0.1):
    H = h_units
    shapes = dict(
        W1=(H, 1), b1=(H,), W2=(H, H), b2=(H,),
        W3=(H, 1), b3=(H,), W4=(H, 2 * H), b4=(H,),
        W5=(H, 1), b5=(H,), W6=(H, 2 * H), b6=(H,),
        W7=(H, H), b7=(H,), W8=(H, H), b8=(H,), W9=(H, H), b9=(H,),
        Wout=(out_dim, H), bout=(out_dim,))
    keys = jax.random.split(key, len(shapes))
    return {name: scale * jax.random.normal(k, shp, dtype=jnp.float32)
            for (name, shp), k in zip(shapes.items(), keys)}


if __name__ == "__main__":
    # Small, forward-consistent shapes.
    noise_dim = 3          # forward() reads z[:, 0:3]
    in_units, out_units = 4, 5
    h_units = 32
    K = 8                  # batch of latent codes

    key = jax.random.PRNGKey(0)
    kz, kw, kb = jax.random.split(key, 3)
    z = jax.random.normal(kz, (K, noise_dim), dtype=jnp.float32)
    params_w = _init_hypernet_params(kw, h_units, out_units * in_units)  # mu_w head
    params_b = _init_hypernet_params(kb, h_units, out_units)             # mu_b head

    mu_ref = reference_forward(z, params_w, params_b)

    # f32 matmul operands (default; tight tolerance vs. reference).
    weights_f32, p_tot = prepare_fused_params(params_w, params_b, h_units,
                                              matmul_dtype=jnp.float32)
    mu = single_hyper_network_forward(z, weights_f32, p_tot=p_tot)
    jax.block_until_ready(mu)
    assert mu.shape == (K, out_units * in_units + out_units)
    np.testing.assert_allclose(np.asarray(mu), np.asarray(mu_ref),
                               rtol=1e-4, atol=1e-5)

    # bf16 matmul operands (MXU-rate path for v6e/v7x; f32 accumulation/biases).
    weights_bf16, _ = prepare_fused_params(params_w, params_b, h_units,
                                           matmul_dtype=jnp.bfloat16)
    mu16 = single_hyper_network_forward(z, weights_bf16, p_tot=p_tot)
    jax.block_until_ready(mu16)
    np.testing.assert_allclose(np.asarray(mu16), np.asarray(mu_ref),
                               rtol=5e-2, atol=5e-2)

    print("KERNEL_OK")
</pallas_src>

<mosaic_0001>
module attributes {stable_mosaic.version = 11 : i64} {
  func.func @_hyper_kernel(%arg0: i32, %arg1: memref<8x3xf32, #tpu.memory_space<vmem>>, %arg2: memref<16x128xf32, #tpu.memory_space<vmem>>, %arg3: memref<5x128x128xf32, #tpu.memory_space<vmem>>, %arg4: memref<128x128xf32, #tpu.memory_space<vmem>>, %arg5: memref<1x128xf32, #tpu.memory_space<vmem>>, %arg6: memref<8x128xf32, #tpu.memory_space<vmem>>) attributes {dimension_semantics = [#tpu.dimension_semantics<parallel>], iteration_bounds = array<i64: 1>, scalar_prefetch = 0 : i64, scratch_operands = 0 : i64, tpu.core_type = #tpu.core_type<tc>, window_params = [{transform_indices = @transform_0, window_bounds = array<i64: 8, 3>}, {pipeline_mode = #tpu.pipeline_mode<synchronous>, transform_indices = @transform_1, window_bounds = array<i64: 16, 128>}, {pipeline_mode = #tpu.pipeline_mode<synchronous>, transform_indices = @transform_2, window_bounds = array<i64: 5, 128, 128>}, {pipeline_mode = #tpu.pipeline_mode<synchronous>, transform_indices = @transform_3, window_bounds = array<i64: 128, 128>}, {pipeline_mode = #tpu.pipeline_mode<synchronous>, transform_indices = @transform_4, window_bounds = array<i64: 1, 128>}, {transform_indices = @transform_5, window_bounds = array<i64: 8, 128>}]} {
    %c0 = arith.constant 0 : index
    %c0_0 = arith.constant 0 : index
    %0 = vector.load %arg1[%c0, %c0_0] : memref<8x3xf32, #tpu.memory_space<vmem>>, vector<8x3xf32>
    %1 = vector.extract_strided_slice %0 {offsets = [0, 0], sizes = [8, 1], strides = [1, 1]} : vector<8x3xf32> to vector<8x1xf32>
    %2 = vector.extract_strided_slice %0 {offsets = [0, 1], sizes = [8, 1], strides = [1, 1]} : vector<8x3xf32> to vector<8x1xf32>
    %3 = vector.extract_strided_slice %0 {offsets = [0, 2], sizes = [8, 1], strides = [1, 1]} : vector<8x3xf32> to vector<8x1xf32>
    %c0_1 = arith.constant 0 : index
    %c0_2 = arith.constant 0 : index
    %4 = vector.load %arg2[%c0_1, %c0_2] : memref<16x128xf32, #tpu.memory_space<vmem>>, vector<1x128xf32>
    %c1 = arith.constant 1 : index
    %c0_3 = arith.constant 0 : index
    %5 = vector.load %arg2[%c1, %c0_3] : memref<16x128xf32, #tpu.memory_space<vmem>>, vector<1x128xf32>
    %c2 = arith.constant 2 : index
    %c0_4 = arith.constant 0 : index
    %6 = vector.load %arg2[%c2, %c0_4] : memref<16x128xf32, #tpu.memory_space<vmem>>, vector<1x128xf32>
    %c3 = arith.constant 3 : index
    %c0_5 = arith.constant 0 : index
    %7 = vector.load %arg2[%c3, %c0_5] : memref<16x128xf32, #tpu.memory_space<vmem>>, vector<1x128xf32>
    %c4 = arith.constant 4 : index
    %c0_6 = arith.constant 0 : index
    %8 = vector.load %arg2[%c4, %c0_6] : memref<16x128xf32, #tpu.memory_space<vmem>>, vector<1x128xf32>
    %c5 = arith.constant 5 : index
    %c0_7 = arith.constant 0 : index
    %9 = vector.load %arg2[%c5, %c0_7] : memref<16x128xf32, #tpu.memory_space<vmem>>, vector<1x128xf32>
    %c6 = arith.constant 6 : index
    %c0_8 = arith.constant 0 : index
    %10 = vector.load %arg2[%c6, %c0_8] : memref<16x128xf32, #tpu.memory_space<vmem>>, vector<1x128xf32>
    %c7 = arith.constant 7 : index
    %c0_9 = arith.constant 0 : index
    %11 = vector.load %arg2[%c7, %c0_9] : memref<16x128xf32, #tpu.memory_space<vmem>>, vector<1x128xf32>
    %c8 = arith.constant 8 : index
    %c0_10 = arith.constant 0 : index
    %12 = vector.load %arg2[%c8, %c0_10] : memref<16x128xf32, #tpu.memory_space<vmem>>, vector<1x128xf32>
    %13 = vector.broadcast %1 : vector<8x1xf32> to vector<8x128xf32>
    %14 = vector.broadcast %4 : vector<1x128xf32> to vector<8x128xf32>
    %15 = arith.mulf %13, %14 : vector<8x128xf32>
    %16 = vector.broadcast %5 : vector<1x128xf32> to vector<8x128xf32>
    %17 = arith.addf %15, %16 : vector<8x128xf32>
    %cst = arith.constant 0.000000e+00 : f32
    %18 = vector.broadcast %cst : f32 to vector<8x128xf32>
    %19 = arith.cmpf oge, %17, %18 : vector<8x128xf32>
    %cst_11 = arith.constant 0.00999999977 : f32
    %20 = vector.broadcast %cst_11 : f32 to vector<8x128xf32>
    %21 = arith.mulf %20, %17 : vector<8x128xf32>
    %22 = arith.select %19, %17, %21 : vector<8x128xi1>, vector<8x128xf32>
    %c0_12 = arith.constant 0 : index
    %c0_13 = arith.constant 0 : index
    %c0_14 = arith.constant 0 : index
    %23 = vector.load %arg3[%c0_12, %c0_13, %c0_14] : memref<5x128x128xf32, #tpu.memory_space<vmem>>, vector<1x128x128xf32>
    %24 = vector.shape_cast %23 : vector<1x128x128xf32> to vector<128x128xf32>
    %cst_15 = arith.constant dense<0.000000e+00> : vector<8x128xf32>
    %25 = tpu.matmul %22, %24, %cst_15 {dimension_numbers = #tpu.dot_dimension_numbers<[1], [0], [0], [1], [0, 0, 1, 1], [], []>} : vector<8x128xf32>, vector<128x128xf32>, vector<8x128xf32> -> vector<8x128xf32>
    %26 = vector.broadcast %2 : vector<8x1xf32> to vector<8x128xf32>
    %27 = vector.broadcast %6 : vector<1x128xf32> to vector<8x128xf32>
    %28 = arith.mulf %26, %27 : vector<8x128xf32>
    %29 = arith.addf %25, %28 : vector<8x128xf32>
    %30 = vector.broadcast %7 : vector<1x128xf32> to vector<8x128xf32>
    %31 = arith.addf %29, %30 : vector<8x128xf32>
    %cst_16 = arith.constant 0.000000e+00 : f32
    %32 = vector.broadcast %cst_16 : f32 to vector<8x128xf32>
    %33 = arith.cmpf oge, %31, %32 : vector<8x128xf32>
    %cst_17 = arith.constant 0.00999999977 : f32
    %34 = vector.broadcast %cst_17 : f32 to vector<8x128xf32>
    %35 = arith.mulf %34, %31 : vector<8x128xf32>
    %36 = arith.select %33, %31, %35 : vector<8x128xi1>, vector<8x128xf32>
    %c1_18 = arith.constant 1 : index
    %c0_19 = arith.constant 0 : index
    %c0_20 = arith.constant 0 : index
    %37 = vector.load %arg3[%c1_18, %c0_19, %c0_20] : memref<5x128x128xf32, #tpu.memory_space<vmem>>, vector<1x128x128xf32>
    %38 = vector.shape_cast %37 : vector<1x128x128xf32> to vector<128x128xf32>
    %cst_21 = arith.constant dense<0.000000e+00> : vector<8x128xf32>
    %39 = tpu.matmul %36, %38, %cst_21 {dimension_numbers = #tpu.dot_dimension_numbers<[1], [0], [0], [1], [0, 0, 1, 1], [], []>} : vector<8x128xf32>, vector<128x128xf32>, vector<8x128xf32> -> vector<8x128xf32>
    %40 = vector.broadcast %3 : vector<8x1xf32> to vector<8x128xf32>
    %41 = vector.broadcast %8 : vector<1x128xf32> to vector<8x128xf32>
    %42 = arith.mulf %40, %41 : vector<8x128xf32>
    %43 = arith.addf %39, %42 : vector<8x128xf32>
    %44 = vector.broadcast %9 : vector<1x128xf32> to vector<8x128xf32>
    %45 = arith.addf %43, %44 : vector<8x128xf32>
    %cst_22 = arith.constant 0.000000e+00 : f32
    %46 = vector.broadcast %cst_22 : f32 to vector<8x128xf32>
    %47 = arith.cmpf oge, %45, %46 : vector<8x128xf32>
    %cst_23 = arith.constant 0.00999999977 : f32
    %48 = vector.broadcast %cst_23 : f32 to vector<8x128xf32>
    %49 = arith.mulf %48, %45 : vector<8x128xf32>
    %50 = arith.select %47, %45, %49 : vector<8x128xi1>, vector<8x128xf32>
    %c2_24 = arith.constant 2 : index
    %c0_25 = arith.constant 0 : index
    %c0_26 = arith.constant 0 : index
    %51 = vector.load %arg3[%c2_24, %c0_25, %c0_26] : memref<5x128x128xf32, #tpu.memory_space<vmem>>, vector<1x128x128xf32>
    %52 = vector.shape_cast %51 : vector<1x128x128xf32> to vector<128x128xf32>
    %cst_27 = arith.constant dense<0.000000e+00> : vector<8x128xf32>
    %53 = tpu.matmul %50, %52, %cst_27 {dimension_numbers = #tpu.dot_dimension_numbers<[1], [0], [0], [1], [0, 0, 1, 1], [], []>} : vector<8x128xf32>, vector<128x128xf32>, vector<8x128xf32> -> vector<8x128xf32>
    %54 = vector.broadcast %10 : vector<1x128xf32> to vector<8x128xf32>
    %55 = arith.addf %53, %54 : vector<8x128xf32>
    %cst_28 = arith.constant 0.000000e+00 : f32
    %56 = vector.broadcast %cst_28 : f32 to vector<8x128xf32>
    %57 = arith.cmpf oge, %55, %56 : vector<8x128xf32>
    %cst_29 = arith.constant 0.00999999977 : f32
    %58 = vector.broadcast %cst_29 : f32 to vector<8x128xf32>
    %59 = arith.mulf %58, %55 : vector<8x128xf32>
    %60 = arith.select %57, %55, %59 : vector<8x128xi1>, vector<8x128xf32>
    %c3_30 = arith.constant 3 : index
    %c0_31 = arith.constant 0 : index
    %c0_32 = arith.constant 0 : index
    %61 = vector.load %arg3[%c3_30, %c0_31, %c0_32] : memref<5x128x128xf32, #tpu.memory_space<vmem>>, vector<1x128x128xf32>
    %62 = vector.shape_cast %61 : vector<1x128x128xf32> to vector<128x128xf32>
    %cst_33 = arith.constant dense<0.000000e+00> : vector<8x128xf32>
    %63 = tpu.matmul %60, %62, %cst_33 {dimension_numbers = #tpu.dot_dimension_numbers<[1], [0], [0], [1], [0, 0, 1, 1], [], []>} : vector<8x128xf32>, vector<128x128xf32>, vector<8x128xf32> -> vector<8x128xf32>
    %64 = vector.broadcast %11 : vector<1x128xf32> to vector<8x128xf32>
    %65 = arith.addf %63, %64 : vector<8x128xf32>
    %cst_34 = arith.constant 0.000000e+00 : f32
    %66 = vector.broadcast %cst_34 : f32 to vector<8x128xf32>
    %67 = arith.cmpf oge, %65, %66 : vector<8x128xf32>
    %cst_35 = arith.constant 0.00999999977 : f32
    %68 = vector.broadcast %cst_35 : f32 to vector<8x128xf32>
    %69 = arith.mulf %68, %65 : vector<8x128xf32>
    %70 = arith.select %67, %65, %69 : vector<8x128xi1>, vector<8x128xf32>
    %c4_36 = arith.constant 4 : index
    %c0_37 = arith.constant 0 : index
    %c0_38 = arith.constant 0 : index
    %71 = vector.load %arg3[%c4_36, %c0_37, %c0_38] : memref<5x128x128xf32, #tpu.memory_space<vmem>>, vector<1x128x128xf32>
    %72 = vector.shape_cast %71 : vector<1x128x128xf32> to vector<128x128xf32>
    %cst_39 = arith.constant dense<0.000000e+00> : vector<8x128xf32>
    %73 = tpu.matmul %70, %72, %cst_39 {dimension_numbers = #tpu.dot_dimension_numbers<[1], [0], [0], [1], [0, 0, 1, 1], [], []>} : vector<8x128xf32>, vector<128x128xf32>, vector<8x128xf32> -> vector<8x128xf32>
    %74 = vector.broadcast %12 : vector<1x128xf32> to vector<8x128xf32>
    %75 = arith.addf %73, %74 : vector<8x128xf32>
    %cst_40 = arith.constant 0.000000e+00 : f32
    %76 = vector.broadcast %cst_40 : f32 to vector<8x128xf32>
    %77 = arith.cmpf oge, %75, %76 : vector<8x128xf32>
    %cst_41 = arith.constant 0.00999999977 : f32
    %78 = vector.broadcast %cst_41 : f32 to vector<8x128xf32>
    %79 = arith.mulf %78, %75 : vector<8x128xf32>
    %80 = arith.select %77, %75, %79 : vector<8x128xi1>, vector<8x128xf32>
    %c0_42 = arith.constant 0 : index
    %c0_43 = arith.constant 0 : index
    %81 = vector.load %arg4[%c0_42, %c0_43] : memref<128x128xf32, #tpu.memory_space<vmem>>, vector<128x128xf32>
    %cst_44 = arith.constant dense<0.000000e+00> : vector<8x128xf32>
    %82 = tpu.matmul %80, %81, %cst_44 {dimension_numbers = #tpu.dot_dimension_numbers<[1], [0], [0], [1], [0, 0, 1, 1], [], []>} : vector<8x128xf32>, vector<128x128xf32>, vector<8x128xf32> -> vector<8x128xf32>
    %c0_45 = arith.constant 0 : index
    %c0_46 = arith.constant 0 : index
    %83 = vector.load %arg5[%c0_45, %c0_46] : memref<1x128xf32, #tpu.memory_space<vmem>>, vector<1x128xf32>
    %84 = vector.broadcast %83 : vector<1x128xf32> to vector<8x128xf32>
    %85 = arith.addf %82, %84 : vector<8x128xf32>
    %c0_47 = arith.constant 0 : index
    %c0_48 = arith.constant 0 : index
    %86 = vector.load %arg6[%c0_47, %c0_48] : memref<8x128xf32, #tpu.memory_space<vmem>>, vector<8x128xf32>
    tpu.vector_store %arg6[%c0_47, %c0_48], %85 {strides = array<i32>} : memref<8x128xf32, #tpu.memory_space<vmem>>, vector<8x128xf32>,
    return
  }
  func.func @transform_0(%arg0: i32) -> (i32, i32) {
    %c0_i32 = arith.constant 0 : i32
    %c0_i32_0 = arith.constant 0 : i32
    return %arg0, %c0_i32 : i32, i32
  }
  func.func @transform_1(%arg0: i32) -> (i32, i32) {
    %c0_i32 = arith.constant 0 : i32
    %c0_i32_0 = arith.constant 0 : i32
    %c0_i32_1 = arith.constant 0 : i32
    return %c0_i32, %c0_i32_0 : i32, i32
  }
  func.func @transform_2(%arg0: i32) -> (i32, i32, i32) {
    %c0_i32 = arith.constant 0 : i32
    %c0_i32_0 = arith.constant 0 : i32
    %c0_i32_1 = arith.constant 0 : i32
    %c0_i32_2 = arith.constant 0 : i32
    return %c0_i32, %c0_i32_0, %c0_i32_1 : i32, i32, i32
  }
  func.func @transform_3(%arg0: i32) -> (i32, i32) {
    %c0_i32 = arith.constant 0 : i32
    %c0_i32_0 = arith.constant 0 : i32
    %c0_i32_1 = arith.constant 0 : i32
    return %c0_i32, %c0_i32_0 : i32, i32
  }
  func.func @transform_4(%arg0: i32) -> (i32, i32) {
    %c0_i32 = arith.constant 0 : i32
    %c0_i32_0 = arith.constant 0 : i32
    %c0_i32_1 = arith.constant 0 : i32
    return %c0_i32, %c0_i32_0 : i32, i32
  }
  func.func @transform_5(%arg0: i32) -> (i32, i32) {
    %c0_i32 = arith.constant 0 : i32
    %c0_i32_0 = arith.constant 0 : i32
    return %arg0, %c0_i32 : i32, i32
  }
}

</mosaic_0001>

<bundles_post_ra>
// kernel: single_hyper_network_forward.1
= control target key start
LH: loop header
LB: loop body
LE: loop exit
PB: predicated region body
PF: predicated region fallthrough
CT: control target
= control target key end

     0   :  { %10 = vsyncpa [#allocation3], 0  ;;  %s1273_s0 = inlined_call_operand.vmem [shape: f32[8,3], index: 0, kind: input, shape index: {}]   ;;  %s1274_s1 = inlined_call_operand.vmem [shape: f32[16,128], index: 1, kind: input, shape index: {}]   ;;  %s1275_s2 = inlined_call_operand.hbm [shape: f32[5,128,128], index: 2, kind: input, shape index: {}]   ;;  %s1276_s3 = inlined_call_operand.hbm [shape: f32[128,128], index: 3, kind: input, shape index: {}]   ;;  %s1277_s4 = inlined_call_operand.vmem [shape: f32[1,128], index: 4, kind: input, shape index: {}]   ;;  %s1278_s5 = inlined_call_operand.hbm [shape: f32[8,128], index: 5, kind: output, shape index: {}]  }
   0x1   :  { %11 = vsyncpa [#allocation6], 0 }
   0x2   :  { %12 = vsyncpa [#allocation4], 0  ;;  %s1078_s18 = smov [#allocation2]  }
   0x3   :  { %s22_s19 = sshll.u32 %s1078_s18, 4  ;;  %s23_s19 = int_to_ptr.vmem [resolvable:$true] %s22_s19 }
   0x4   :  { %s1020_s20 = scalar_lea.vmem %s23_s19, 10240  ;;  %p1025_p1 = scmp.lt.s32.totalorder %s23_s19, %s23_s19 }
   0x5   :  { %p1021_p0 = scmp.ne.s32.totalorder %s23_s19, %s1020_s20  ;;  %p1026_p2 = scmp.lt.s32.totalorder %s1020_s20, %s1020_s20 }
   0x7   :  { %p1027_p3 = por %p1026_p2, %p1025_p1 }
   0x9   :  { %p1028_p4 = pnand %p1027_p3, %p1021_p0 }
   0xb   :  { %1031 = shalt.err (!%p1028_p4)
}
   0xc   :  { %s1079_s21 = smov 128   ;;  %s1080_s22 = smov 8  }
   0xd   :  { %28 = dma.hbm_to_vmem [thread:$0]  %s1275_s2, 10240, %s23_s19, [#allocation3], %s1079_s21, %s1079_s21, %s1080_s22  }
   0xe   :  { %s1081_s25 = smov [#allocation5]  }
   0xf   :  { %s34_s26 = sshll.u32 %s1081_s25, 4  ;;  %s35_s26 = int_to_ptr.vmem [resolvable:$true] %s34_s26 }
  0x10   :  { %s1040_s27 = scalar_lea.vmem %s35_s26, 2048  ;;  %p1045_p6 = scmp.lt.s32.totalorder %s35_s26, %s35_s26 }
  0x11   :  { %p1041_p5 = scmp.ne.s32.totalorder %s35_s26, %s1040_s27  ;;  %p1046_p7 = scmp.lt.s32.totalorder %s1040_s27, %s1040_s27 }
  0x13   :  { %p1047_p8 = por %p1046_p7, %p1045_p6 }
  0x15   :  { %p1048_p9 = pnand %p1047_p8, %p1041_p5 }
  0x17   :  { %1051 = shalt.err (!%p1048_p9)
}
  0x18   :  { %40 = dma.hbm_to_vmem [thread:$0]  %s1276_s3, 2048, %s35_s26, [#allocation6], %s1079_s21, %s1079_s21, %s1080_s22  }
  0x19   :  { %1072 = dma.done.wait [#allocation3], 10240  }
  0x1a   :  { %1073 = vsyncadd [#allocation3], 4294957056 }
  0x1b   :  { %1074 = dma.done.wait [#allocation6], 2048  }
  0x1c   :  { %1075 = vsyncadd [#allocation6], 4294965248  ;;  %v1082_v0 = vmov 0   ;;  %v1083_v1 = vmov 0.0   ;;  %v1129_v2 = vld [vmem:[%s1273_s0] sm:$0xff]  ;;  %v92_v3 = vld [vmem:[#allocation2 + $0x78] sm:$0xff] }
  0x1d   :  { %1008 = vset.pattern.permute.xlu0 %v1082_v0  ;;  %788 = vmatprep.subr.mxu0 %v1083_v1  ;;  %v91_v4 = vld [vmem:[#allocation2 + $0x70] sm:$0xff]  ;;  %vm1084_vm0 = vmmov 0   ;;  %v90_v5 = vld [vmem:[#allocation2 + $0x68] sm:$0xff]  ;;  %v89_v6 = vld [vmem:[#allocation2 + $0x60] sm:$0xff]  ;;  %v1085_v7 = vmov 1   ;;  %v1086_v45 = vmov 2  }
  0x1e   :  { %823 = vmatprep.subr.mxu1 %v1083_v1  ;;  %820 = vmatprep.mubr.msk.f32.mxu0 %vm1084_vm0, %v1083_v1  ;;  %v88_v8 = vld [vmem:[#allocation2 + $0x58] sm:$0xff]  ;;  %v195_v10 = vld [vmem:[#allocation2 + $0xf0] sm:$0xff]  ;;  %v194_v12 = vld [vmem:[#allocation2 + $0xe8] sm:$0xff]  ;;  %s1087_s24 = smov [#allocation7]  }
  0x1f   :  { %855 = vmatprep.mubr.msk.f32.mxu1 %vm1084_vm0, %v1083_v1  ;;  %61 = vperm.xlu0 %1008, %v1129_v2   ;;  %v196_v9 = vld [vmem:[#allocation2 + $0xf8] sm:$0xff]  ;;  %v87_v11 = vld [vmem:[#allocation2 + $0x50] sm:$0xff]  ;;  %v86_v13 = vld [vmem:[#allocation2 + $0x48] sm:$0xff]  ;;  %s666_s25 = sshll.u32 %s1087_s24, 4  ;;  %s667_s25 = int_to_ptr.vmem [resolvable:$true] %s666_s25 }
  0x20   :  { %789 = vmatpush3.msra.mxu0 %v92_v3  ;;  %824 = vmatpush3.msra.mxu1 %v196_v9  ;;  %v193_v14 = vld [vmem:[#allocation2 + $0xe0] sm:$0xff]  ;;  %v192_v16 = vld [vmem:[#allocation2 + $0xd8] sm:$0xff]  ;;  %v191_v18 = vld [vmem:[#allocation2 + $0xd0] sm:$0xff]  ;;  %s1052_s26 = scalar_lea.vmem %s667_s25, 128  ;;  %p1057_p11 = scmp.lt.s32.totalorder %s667_s25, %s667_s25 }
  0x21   :  { %790 = vmatprep.subr.mxu0 %v1083_v1  ;;  %825 = vmatprep.subr.mxu1 %v1083_v1  ;;  %v85_v15 = vld [vmem:[#allocation2 + $0x40] sm:$0xff]  ;;  %v84_v17 = vld [vmem:[#allocation2 + $0x38] sm:$0xff]  ;;  %v83_v19 = vld [vmem:[#allocation2 + $0x30] sm:$0xff]  ;;  %p1053_p10 = scmp.ne.s32.totalorder %s667_s25, %s1052_s26  ;;  %p1058_p12 = scmp.lt.s32.totalorder %s1052_s26, %s1052_s26 }
  0x22   :  { %791 = vmatpush3.msra.mxu0 %v91_v4  ;;  %826 = vmatpush3.msra.mxu1 %v195_v10  ;;  %v190_v20 = vld [vmem:[#allocation2 + $0xc8] sm:$0xff]  ;;  %v189_v22 = vld [vmem:[#allocation2 + $0xc0] sm:$0xff]  ;;  %v188_v24 = vld [vmem:[#allocation2 + $0xb8] sm:$0xff] }
  0x23   :  { %792 = vmatprep.subr.mxu0 %v1083_v1  ;;  %1009 = vset.pattern.permute.xlu0 %v1085_v7  ;;  %v82_v21 = vld [vmem:[#allocation2 + $0x28] sm:$0xff]  ;;  %v81_v23 = vld [vmem:[#allocation2 + $0x20] sm:$0xff]  ;;  %v80_v25 = vld [vmem:[#allocation2 + $0x18] sm:$0xff]  ;;  %p1059_p13 = por %p1058_p12, %p1057_p11 }
  0x24   :  { %793 = vmatpush3.msra.mxu0 %v90_v5  ;;  %94 = vperm.xlu0 %1009, %v1129_v2   ;;  %v187_v26 = vld [vmem:[#allocation2 + $0xb0] sm:$0xff]  ;;  %v186_v28 = vld [vmem:[#allocation2 + $0xa8] sm:$0xff]  ;;  %v185_v30 = vld [vmem:[#allocation2 + $0xa0] sm:$0xff] }
  0x25   :  { %794 = vmatprep.subr.mxu0 %v1083_v1  ;;  %827 = vmatprep.subr.mxu1 %v1083_v1  ;;  %v79_v27 = vld [vmem:[#allocation2 + $0x10] sm:$0xff]  ;;  %v78_v29 = vld [vmem:[#allocation2 + $0x8] sm:$0xff]  ;;  %v77_v31 = vld [vmem:[#allocation2] sm:$0xff]  ;;  %p1060_p0 = pnand %p1059_p13, %p1053_p10 }
  0x26   :  { %795 = vmatpush3.msra.mxu0 %v89_v6  ;;  %828 = vmatpush3.msra.mxu1 %v194_v12  ;;  %v676_v32 = vld [vmem:[%s1274_s1] ss:$0 sm:$0xff]  ;;  %v677_v33 = vld [vmem:[%s1274_s1 + $0x1] ss:$0 sm:$0xff]  ;;  %v184_v39 = vld [vmem:[#allocation2 + $0x98] sm:$0xff] }
  0x27   :  { %796 = vmatprep.subr.mxu0 %v1083_v1  ;;  %829 = vmatprep.subr.mxu1 %v1083_v1  ;;  %v183_v40 = vld [vmem:[#allocation2 + $0x90] sm:$0xff]  ;;  %v182_v41 = vld [vmem:[#allocation2 + $0x88] sm:$0xff]  ;;  %v181_v42 = vld [vmem:[#allocation2 + $0x80] sm:$0xff] }
  0x28   :  { %797 = vmatpush3.msra.mxu0 %v88_v8  ;;  %830 = vmatpush3.msra.mxu1 %v193_v14  ;;  %v300_v43 = vld [vmem:[#allocation2 + $0x178] sm:$0xff]  ;;  %v299_v44 = vld [vmem:[#allocation2 + $0x170] sm:$0xff]  ;;  %v298_v46 = vld [vmem:[#allocation2 + $0x168] sm:$0xff] }
  0x29   :  { %798 = vmatprep.subr.mxu0 %v1083_v1  ;;  %831 = vmatprep.subr.mxu1 %v1083_v1  ;;  %v297_v47 = vld [vmem:[#allocation2 + $0x160] sm:$0xff]  ;;  %v296_v48 = vld [vmem:[#allocation2 + $0x158] sm:$0xff]  ;;  %v295_v49 = vld [vmem:[#allocation2 + $0x150] sm:$0xff] }
  0x2a   :  { %799 = vmatpush3.msra.mxu0 %v87_v11  ;;  %832 = vmatpush3.msra.mxu1 %v192_v16  ;;  %v294_v50 = vld [vmem:[#allocation2 + $0x148] sm:$0xff]  ;;  %v293_v51 = vld [vmem:[#allocation2 + $0x140] sm:$0xff]  ;;  %v292_v52 = vld [vmem:[#allocation2 + $0x138] sm:$0xff] }
  0x2b   :  { %800 = vmatprep.subr.mxu0 %v1083_v1  ;;  %833 = vmatprep.subr.mxu1 %v1083_v1  ;;  %v291_v53 = vld [vmem:[#allocation2 + $0x130] sm:$0xff]  ;;  %v290_v54 = vld [vmem:[#allocation2 + $0x128] sm:$0xff]  ;;  %v289_v55 = vld [vmem:[#allocation2 + $0x120] sm:$0xff] }
  0x2c   :  { %801 = vmatpush3.msra.mxu0 %v86_v13  ;;  %834 = vmatpush3.msra.mxu1 %v191_v18  ;;  %v678_v56 = vld [vmem:[%s1274_s1 + $0x2] ss:$0 sm:$0xff]  ;;  %v679_v59 = vld [vmem:[%s1274_s1 + $0x3] ss:$0 sm:$0xff]  ;;  %v288_v3 = vld [vmem:[#allocation2 + $0x118] sm:$0xff] }
  0x2d   :  { %802 = vmatprep.subr.mxu0 %v1083_v1  ;;  %835 = vmatprep.subr.mxu1 %v1083_v1  ;;  %v287_v4 = vld [vmem:[#allocation2 + $0x110] sm:$0xff]  ;;  %v286_v5 = vld [vmem:[#allocation2 + $0x108] sm:$0xff]  ;;  %v285_v6 = vld [vmem:[#allocation2 + $0x100] sm:$0xff] }
  0x2e   :  { %803 = vmatpush3.msra.mxu0 %v85_v15  ;;  %836 = vmatpush3.msra.mxu1 %v190_v20  ;;  %v394_v7 = vld [vmem:[#allocation2 + $0x1f8] sm:$0xff]  ;;  %v393_v8 = vld [vmem:[#allocation2 + $0x1f0] sm:$0xff]  ;;  %v392_v9 = vld [vmem:[#allocation2 + $0x1e8] sm:$0xff] }
  0x2f   :  { %804 = vmatprep.subr.mxu0 %v1083_v1  ;;  %837 = vmatprep.subr.mxu1 %v1083_v1  ;;  %v391_v10 = vld [vmem:[#allocation2 + $0x1e0] sm:$0xff]  ;;  %v390_v11 = vld [vmem:[#allocation2 + $0x1d8] sm:$0xff]  ;;  %v389_v12 = vld [vmem:[#allocation2 + $0x1d0] sm:$0xff] }
  0x30   :  { %805 = vmatpush3.msra.mxu0 %v84_v17  ;;  %838 = vmatpush3.msra.mxu1 %v189_v22  ;;  %v388_v13 = vld [vmem:[#allocation2 + $0x1c8] sm:$0xff]  ;;  %v387_v14 = vld [vmem:[#allocation2 + $0x1c0] sm:$0xff]  ;;  %v386_v15 = vld [vmem:[#allocation2 + $0x1b8] sm:$0xff] }
  0x31   :  { %806 = vmatprep.subr.mxu0 %v1083_v1  ;;  %839 = vmatprep.subr.mxu1 %v1083_v1  ;;  %v385_v16 = vld [vmem:[#allocation2 + $0x1b0] sm:$0xff]  ;;  %v384_v17 = vld [vmem:[#allocation2 + $0x1a8] sm:$0xff]  ;;  %v383_v18 = vld [vmem:[#allocation2 + $0x1a0] sm:$0xff] }
  0x32   :  { %807 = vmatpush3.msra.mxu0 %v83_v19  ;;  %840 = vmatpush3.msra.mxu1 %v188_v24  ;;  %v382_v19 = vld [vmem:[#allocation2 + $0x198] sm:$0xff]  ;;  %v680_v20 = vld [vmem:[%s1274_s1 + $0x4] ss:$0 sm:$0xff] }
  0x33   :  { %808 = vmatprep.subr.mxu0 %v1083_v1  ;;  %841 = vmatprep.subr.mxu1 %v1083_v1 }
  0x34   :  { %809 = vmatpush3.msra.mxu0 %v82_v21  ;;  %842 = vmatpush3.msra.mxu1 %v187_v26 }
  0x35   :  { %810 = vmatprep.subr.mxu0 %v1083_v1  ;;  %843 = vmatprep.subr.mxu1 %v1083_v1 }
  0x36   :  { %811 = vmatpush3.msra.mxu0 %v81_v23  ;;  %844 = vmatpush3.msra.mxu1 %v186_v28  ;;  %v681_v23 = vld [vmem:[%s1274_s1 + $0x5] ss:$0 sm:$0xff] }
  0x37   :  { %812 = vmatprep.subr.mxu0 %v1083_v1  ;;  %845 = vmatprep.subr.mxu1 %v1083_v1 }
  0x38   :  { %813 = vmatpush3.msra.mxu0 %v80_v25  ;;  %846 = vmatpush3.msra.mxu1 %v185_v30  ;;  %v381_v30 = vld [vmem:[#allocation2 + $0x190] sm:$0xff] }
  0x39   :  { %814 = vmatprep.subr.mxu0 %v1083_v1  ;;  %847 = vmatprep.subr.mxu1 %v1083_v1 }
  0x3a   :  { %815 = vmatpush3.msra.mxu0 %v79_v27  ;;  %848 = vmatpush3.msra.mxu1 %v184_v39  ;;  %v482_v39 = vld [vmem:[#allocation2 + $0x248] sm:$0xff] }
  0x3b   :  { %816 = vmatprep.subr.mxu0 %v1083_v1  ;;  %849 = vmatprep.subr.mxu1 %v1083_v1 }
  0x3c   :  { %817 = vmatpush3.msra.mxu0 %v78_v29  ;;  %850 = vmatpush3.msra.mxu1 %v183_v40  ;;  %v481_v40 = vld [vmem:[#allocation2 + $0x240] sm:$0xff] }
  0x3d   :  { %818 = vmatprep.subr.mxu0 %v1083_v1  ;;  %851 = vmatprep.subr.mxu1 %v1083_v1 }
  0x3e   :  { %819 = vmatpush3.msra.mxu0 %v77_v31  ;;  %852 = vmatpush3.msra.mxu1 %v182_v41  ;;  %v380_v31 = vld [vmem:[#allocation2 + $0x188] sm:$0xff]  ;;  %v480_v41 = vld [vmem:[#allocation2 + $0x238] sm:$0xff] }
  0x3f   :  { %858 = vmatprep.subr.mxu0 %v1083_v1  ;;  %853 = vmatprep.subr.mxu1 %v1083_v1 }
  0x40   :  { %854 = vmatpush3.msra.mxu1 %v181_v42  ;;  %1010 = vset.pattern.permute.xlu1 %v1086_v45  ;;  %v479_v42 = vld [vmem:[#allocation2 + $0x230] sm:$0xff] }
  0x41   :  { %893 = vmatprep.subr.mxu1 %v1083_v1  ;;  %198 = vperm.xlu1 %1010, %v1129_v2  }
  0x42   :  { %1011 = vset.pattern.permute.xlu0 %v1086_v45  ;;  %v476_v45 = vld [vmem:[#allocation2 + $0x218] sm:$0xff] }
  0x9a   :  { %v62_v34 = vpop.permute.xlu0 %61 }
  0x9b   :  { %v68_v35 = vmul.f32 %v676_v32, %v62_v34  ;;  %v379_v32 = vld [vmem:[#allocation2 + $0x180] sm:$0xff]  ;;  %v487_v34 = vld [vmem:[#allocation2 + $0x270] sm:$0xff] }
  0x9d   :  { %v73_v36 = vadd.f32 %v677_v33, %v68_v35  ;;  %v488_v33 = vld [vmem:[#allocation2 + $0x278] sm:$0xff]  ;;  %v486_v35 = vld [vmem:[#allocation2 + $0x268] sm:$0xff] }
  0x9f   :  { %vm74_vm1 = vcmp.ge.f32.partialorder %v73_v36, 0.0  ;;  %v75_v37 = vmul.f32 0.01, %v73_v36  ;;  %v95_v57 = vpop.permute.xlu0 %94 }
  0xa0   :  { %v101_v58 = vmul.f32 %v678_v56, %v95_v57  ;;  %v580_v56 = vld [vmem:[#allocation5 + $0x70] sm:$0xff]  ;;  %v579_v57 = vld [vmem:[#allocation5 + $0x68] sm:$0xff] }
  0xa1   :  { %v76_v38 = vsel %vm74_vm1, %v73_v36, %v75_v37  ;;  %v485_v36 = vld [vmem:[#allocation2 + $0x260] sm:$0xff]  ;;  %v484_v37 = vld [vmem:[#allocation2 + $0x258] sm:$0xff] }
  0xa2   :  { %821 = vmatmul.mubr.f32.vlgmr.msra.gmra.mxu0 %v76_v38  ;;  %v483_v38 = vld [vmem:[#allocation2 + $0x250] sm:$0xff] }
  0xa3   :  { %890 = vmatprep.mubr.msk.f32.mxu0 %vm1084_vm0, %v1083_v1  ;;  %859 = vmatpush3.msra.mxu0 %v300_v43  ;;  %v478_v43 = vld [vmem:[#allocation2 + $0x228] sm:$0xff] }
  0xa4   :  { %860 = vmatprep.subr.mxu0 %v1083_v1 }
  0xa5   :  { %861 = vmatpush3.msra.mxu0 %v299_v44  ;;  %v477_v44 = vld [vmem:[#allocation2 + $0x220] sm:$0xff] }
  0xa6   :  { %862 = vmatprep.subr.mxu0 %v1083_v1 }
  0xa7   :  { %863 = vmatpush3.msra.mxu0 %v298_v46  ;;  %v682_v46 = vld [vmem:[%s1274_s1 + $0x6] ss:$0 sm:$0xff] }
  0xa8   :  { %864 = vmatprep.subr.mxu0 %v1083_v1 }
  0xa9   :  { %865 = vmatpush3.msra.mxu0 %v297_v47 }
  0xaa   :  { %866 = vmatprep.subr.mxu0 %v1083_v1 }
  0xab   :  { %867 = vmatpush3.msra.mxu0 %v296_v48 }
  0xac   :  { %868 = vmatprep.subr.mxu0 %v1083_v1 }
  0xad   :  { %869 = vmatpush3.msra.mxu0 %v295_v49 }
  0xae   :  { %870 = vmatprep.subr.mxu0 %v1083_v1 }
  0xaf   :  { %871 = vmatpush3.msra.mxu0 %v294_v50 }
  0xb0   :  { %872 = vmatprep.subr.mxu0 %v1083_v1 }
  0xb1   :  { %873 = vmatpush3.msra.mxu0 %v293_v51 }
  0xb2   :  { %874 = vmatprep.subr.mxu0 %v1083_v1 }
  0xb3   :  { %875 = vmatpush3.msra.mxu0 %v292_v52  ;;  %v475_v52 = vld [vmem:[#allocation2 + $0x210] sm:$0xff] }
  0xb4   :  { %876 = vmatprep.subr.mxu0 %v1083_v1 }
  0xb5   :  { %877 = vmatpush3.msra.mxu0 %v291_v53  ;;  %v474_v53 = vld [vmem:[#allocation2 + $0x208] sm:$0xff] }
  0xb6   :  { %878 = vmatprep.subr.mxu0 %v1083_v1 }
  0xb7   :  { %879 = vmatpush3.msra.mxu0 %v290_v54  ;;  %v473_v54 = vld [vmem:[#allocation2 + $0x200] sm:$0xff] }
  0xb8   :  { %880 = vmatprep.subr.mxu0 %v1083_v1 }
  0xb9   :  { %881 = vmatpush3.msra.mxu0 %v289_v55  ;;  %v581_v55 = vld [vmem:[#allocation5 + $0x78] sm:$0xff] }
  0xba   :  { %882 = vmatprep.subr.mxu0 %v1083_v1 }
  0xbb   :  { %883 = vmatpush3.msra.mxu0 %v288_v3  ;;  %v570_v3 = vld [vmem:[#allocation5 + $0x20] sm:$0xff] }
  0xbc   :  { %884 = vmatprep.subr.mxu0 %v1083_v1  ;;  %v199_v21 = vpop.permute.xlu1 %198 }
  0xbd   :  { %885 = vmatpush3.msra.mxu0 %v287_v4  ;;  %v205_v22 = vmul.f32 %v680_v20, %v199_v21  ;;  %v569_v4 = vld [vmem:[#allocation5 + $0x18] sm:$0xff]  ;;  %v685_v20 = vld [vmem:[%s1277_s4] ss:$0 sm:$0xff] }
  0xbe   :  { %886 = vmatprep.subr.mxu0 %v1083_v1 }
  0xbf   :  { %887 = vmatpush3.msra.mxu0 %v286_v5  ;;  %v683_v5 = vld [vmem:[%s1274_s1 + $0x7] ss:$0 sm:$0xff] }
  0xc0   :  { %888 = vmatprep.subr.mxu0 %v1083_v1 }
  0xc1   :  { %889 = vmatpush3.msra.mxu0 %v285_v6 }
  0xc2   :  { %928 = vmatprep.subr.mxu0 %v1083_v1 }
 0x162   :  { %v168_v60 = vpop.f32.mrf.mxu0 }
 0x163   :  { %v169_v61 = vadd.f32 %v168_v60, %v101_v58  ;;  %v578_v58 = vld [vmem:[#allocation5 + $0x60] sm:$0xff]  ;;  %v576_v60 = vld [vmem:[#allocation5 + $0x50] sm:$0xff] }
 0x164   :  { %v822_v62 = vpop.f32.mrf.mxu0 }
 0x165   :  { %v176_v63 = vadd.f32 %v679_v59, %v169_v61  ;;  %v577_v59 = vld [vmem:[#allocation5 + $0x58] sm:$0xff]  ;;  %v575_v61 = vld [vmem:[#allocation5 + $0x48] sm:$0xff]  ;;  %v574_v62 = vld [vmem:[#allocation5 + $0x40] sm:$0xff] }
 0x167   :  { %vm177_vm2 = vcmp.ge.f32.partialorder %v176_v63, 0.0  ;;  %v178_v0 = vmul.f32 0.01, %v176_v63 }
 0x169   :  { %v179_v2 = vsel %vm177_vm2, %v176_v63, %v178_v0  ;;  %v573_v63 = vld [vmem:[#allocation5 + $0x38] sm:$0xff]  ;;  %v572_v0 = vld [vmem:[#allocation5 + $0x30] sm:$0xff] }
 0x16a   :  { %856 = vmatmul.mubr.f32.vlgmr.msra.gmra.mxu1 %v179_v2  ;;  %v571_v2 = vld [vmem:[#allocation5 + $0x28] sm:$0xff] }
 0x16b   :  { %925 = vmatprep.mubr.msk.f32.mxu1 %vm1084_vm0, %v1083_v1  ;;  %894 = vmatpush3.msra.mxu1 %v394_v7 }
 0x16c   :  { %895 = vmatprep.subr.mxu1 %v1083_v1 }
 0x16d   :  { %896 = vmatpush3.msra.mxu1 %v393_v8 }
 0x16e   :  { %897 = vmatprep.subr.mxu1 %v1083_v1 }
 0x16f   :  { %898 = vmatpush3.msra.mxu1 %v392_v9 }
 0x170   :  { %899 = vmatprep.subr.mxu1 %v1083_v1 }
 0x171   :  { %900 = vmatpush3.msra.mxu1 %v391_v10 }
 0x172   :  { %901 = vmatprep.subr.mxu1 %v1083_v1 }
 0x173   :  { %902 = vmatpush3.msra.mxu1 %v390_v11  ;;  %v568_v11 = vld [vmem:[#allocation5 + $0x10] sm:$0xff] }
 0x174   :  { %903 = vmatprep.subr.mxu1 %v1083_v1 }
 0x175   :  { %904 = vmatpush3.msra.mxu1 %v389_v12  ;;  %v567_v12 = vld [vmem:[#allocation5 + $0x8] sm:$0xff] }
 0x176   :  { %905 = vmatprep.subr.mxu1 %v1083_v1 }
 0x177   :  { %906 = vmatpush3.msra.mxu1 %v388_v13  ;;  %v566_v13 = vld [vmem:[#allocation5] sm:$0xff] }
 0x178   :  { %907 = vmatprep.subr.mxu1 %v1083_v1 }
 0x179   :  { %908 = vmatpush3.msra.mxu1 %v387_v14  ;;  %v684_v14 = vld [vmem:[%s1274_s1 + $0x8] ss:$0 sm:$0xff] }
 0x17a   :  { %909 = vmatprep.subr.mxu1 %v1083_v1 }
 0x17b   :  { %910 = vmatpush3.msra.mxu1 %v386_v15 }
 0x17c   :  { %911 = vmatprep.subr.mxu1 %v1083_v1 }
 0x17d   :  { %912 = vmatpush3.msra.mxu1 %v385_v16 }
 0x17e   :  { %913 = vmatprep.subr.mxu1 %v1083_v1 }
 0x17f   :  { %914 = vmatpush3.msra.mxu1 %v384_v17 }
 0x180   :  { %915 = vmatprep.subr.mxu1 %v1083_v1 }
 0x181   :  { %916 = vmatpush3.msra.mxu1 %v383_v18 }
 0x182   :  { %917 = vmatprep.subr.mxu1 %v1083_v1 }
 0x183   :  { %918 = vmatpush3.msra.mxu1 %v382_v19 }
 0x184   :  { %919 = vmatprep.subr.mxu1 %v1083_v1 }
 0x185   :  { %920 = vmatpush3.msra.mxu1 %v381_v30 }
 0x186   :  { %921 = vmatprep.subr.mxu1 %v1083_v1 }
 0x187   :  { %922 = vmatpush3.msra.mxu1 %v380_v31 }
 0x188   :  { %923 = vmatprep.subr.mxu1 %v1083_v1 }
 0x189   :  { %924 = vmatpush3.msra.mxu1 %v379_v32 }
 0x18a   :  { %963 = vmatprep.subr.mxu1 %v1083_v1 }
 0x22a   :  { %v272_v24 = vpop.f32.mrf.mxu1 }
 0x22b   :  { %v273_v25 = vadd.f32 %v272_v24, %v205_v22 }
 0x22c   :  { %v857_v26 = vpop.f32.mrf.mxu1 }
 0x22d   :  { %v280_v27 = vadd.f32 %v681_v23, %v273_v25 }
 0x22f   :  { %v282_v28 = vmul.f32 0.01, %v280_v27  ;;  %vm281_vm3 = vcmp.ge.f32.partialorder %v280_v27, 0.0 }
 0x231   :  { %v283_v29 = vsel %vm281_vm3, %v280_v27, %v282_v28 }
 0x232   :  { %891 = vmatmul.mubr.f32.vlgmr.msra.gmra.mxu0 %v283_v29 }
 0x233   :  { %960 = vmatprep.mubr.msk.f32.mxu0 %vm1084_vm0, %v1083_v1  ;;  %929 = vmatpush3.msra.mxu0 %v488_v33 }
 0x234   :  { %930 = vmatprep.subr.mxu0 %v1083_v1 }
 0x235   :  { %931 = vmatpush3.msra.mxu0 %v487_v34 }
 0x236   :  { %932 = vmatprep.subr.mxu0 %v1083_v1 }
 0x237   :  { %933 = vmatpush3.msra.mxu0 %v486_v35 }
 0x238   :  { %934 = vmatprep.subr.mxu0 %v1083_v1 }
 0x239   :  { %935 = vmatpush3.msra.mxu0 %v485_v36 }
 0x23a   :  { %936 = vmatprep.subr.mxu0 %v1083_v1 }
 0x23b   :  { %937 = vmatpush3.msra.mxu0 %v484_v37 }
 0x23c   :  { %938 = vmatprep.subr.mxu0 %v1083_v1 }
 0x23d   :  { %939 = vmatpush3.msra.mxu0 %v483_v38 }
 0x23e   :  { %940 = vmatprep.subr.mxu0 %v1083_v1 }
 0x23f   :  { %941 = vmatpush3.msra.mxu0 %v482_v39 }
 0x240   :  { %942 = vmatprep.subr.mxu0 %v1083_v1 }
 0x241   :  { %943 = vmatpush3.msra.mxu0 %v481_v40 }
 0x242   :  { %944 = vmatprep.subr.mxu0 %v1083_v1 }
 0x243   :  { %945 = vmatpush3.msra.mxu0 %v480_v41 }
 0x244   :  { %946 = vmatprep.subr.mxu0 %v1083_v1 }
 0x245   :  { %947 = vmatpush3.msra.mxu0 %v479_v42 }
 0x246   :  { %948 = vmatprep.subr.mxu0 %v1083_v1 }
 0x247   :  { %949 = vmatpush3.msra.mxu0 %v478_v43 }
 0x248   :  { %950 = vmatprep.subr.mxu0 %v1083_v1 }
 0x249   :  { %951 = vmatpush3.msra.mxu0 %v477_v44 }
 0x24a   :  { %952 = vmatprep.subr.mxu0 %v1083_v1 }
 0x24b   :  { %953 = vmatpush3.msra.mxu0 %v476_v45 }
 0x24c   :  { %954 = vmatprep.subr.mxu0 %v1083_v1 }
 0x24d   :  { %955 = vmatpush3.msra.mxu0 %v475_v52 }
 0x24e   :  { %956 = vmatprep.subr.mxu0 %v1083_v1 }
 0x24f   :  { %957 = vmatpush3.msra.mxu0 %v474_v53 }
 0x250   :  { %958 = vmatprep.subr.mxu0 %v1083_v1 }
 0x251   :  { %959 = vmatpush3.msra.mxu0 %v473_v54 }
 0x2f2   :  { %v371_v47 = vpop.f32.mrf.mxu0 }
 0x2f3   :  { %v372_v48 = vadd.f32 %v682_v46, %v371_v47 }
 0x2f4   :  { %v892_v49 = vpop.f32.mrf.mxu0 }
 0x2f5   :  { %vm375_vm4 = vcmp.ge.f32.partialorder %v372_v48, 0.0  ;;  %v376_v50 = vmul.f32 0.01, %v372_v48 }
 0x2f7   :  { %v377_v51 = vsel %vm375_vm4, %v372_v48, %v376_v50 }
 0x2f8   :  { %926 = vmatmul.mubr.f32.vlgmr.msra.gmra.mxu1 %v377_v51 }
 0x2f9   :  { %995 = vmatprep.mubr.msk.f32.mxu1 %vm1084_vm0, %v1083_v1  ;;  %964 = vmatpush3.msra.mxu1 %v581_v55 }
 0x2fa   :  { %965 = vmatprep.subr.mxu1 %v1083_v1 }
 0x2fb   :  { %966 = vmatpush3.msra.mxu1 %v580_v56 }
 0x2fc   :  { %967 = vmatprep.subr.mxu1 %v1083_v1 }
 0x2fd   :  { %968 = vmatpush3.msra.mxu1 %v579_v57 }
 0x2fe   :  { %969 = vmatprep.subr.mxu1 %v1083_v1 }
 0x2ff   :  { %970 = vmatpush3.msra.mxu1 %v578_v58 }
 0x300   :  { %971 = vmatprep.subr.mxu1 %v1083_v1 }
 0x301   :  { %972 = vmatpush3.msra.mxu1 %v577_v59 }
 0x302   :  { %973 = vmatprep.subr.mxu1 %v1083_v1 }
 0x303   :  { %974 = vmatpush3.msra.mxu1 %v576_v60 }
 0x304   :  { %975 = vmatprep.subr.mxu1 %v1083_v1 }
 0x305   :  { %976 = vmatpush3.msra.mxu1 %v575_v61 }
 0x306   :  { %977 = vmatprep.subr.mxu1 %v1083_v1 }
 0x307   :  { %978 = vmatpush3.msra.mxu1 %v574_v62 }
 0x308   :  { %979 = vmatprep.subr.mxu1 %v1083_v1 }
 0x309   :  { %980 = vmatpush3.msra.mxu1 %v573_v63 }
 0x30a   :  { %981 = vmatprep.subr.mxu1 %v1083_v1 }
 0x30b   :  { %982 = vmatpush3.msra.mxu1 %v572_v0 }
 0x30c   :  { %983 = vmatprep.subr.mxu1 %v1083_v1 }
 0x30d   :  { %984 = vmatpush3.msra.mxu1 %v571_v2 }
 0x30e   :  { %985 = vmatprep.subr.mxu1 %v1083_v1 }
 0x30f   :  { %986 = vmatpush3.msra.mxu1 %v570_v3 }
 0x310   :  { %987 = vmatprep.subr.mxu1 %v1083_v1 }
 0x311   :  { %988 = vmatpush3.msra.mxu1 %v569_v4 }
 0x312   :  { %989 = vmatprep.subr.mxu1 %v1083_v1 }
 0x313   :  { %990 = vmatpush3.msra.mxu1 %v568_v11 }
 0x314   :  { %991 = vmatprep.subr.mxu1 %v1083_v1 }
 0x315   :  { %992 = vmatpush3.msra.mxu1 %v567_v12 }
 0x316   :  { %993 = vmatprep.subr.mxu1 %v1083_v1 }
 0x317   :  { %994 = vmatpush3.msra.mxu1 %v566_v13 }
 0x3b8   :  { %v465_v6 = vpop.f32.mrf.mxu1 }
 0x3b9   :  { %v466_v7 = vadd.f32 %v683_v5, %v465_v6 }
 0x3ba   :  { %v927_v8 = vpop.f32.mrf.mxu1 }
 0x3bb   :  { %vm469_vm5 = vcmp.ge.f32.partialorder %v466_v7, 0.0  ;;  %v470_v9 = vmul.f32 0.01, %v466_v7 }
 0x3bd   :  { %v471_v10 = vsel %vm469_vm5, %v466_v7, %v470_v9 }
 0x3be   :  { %961 = vmatmul.mubr.f32.vlgmr.msra.gmra.mxu0 %v471_v10 }
 0x47e   :  { %v559_v15 = vpop.f32.mrf.mxu0 }
 0x47f   :  { %v560_v16 = vadd.f32 %v684_v14, %v559_v15 }
 0x480   :  { %v962_v17 = vpop.f32.mrf.mxu0 }
 0x481   :  { %vm563_vm6 = vcmp.ge.f32.partialorder %v560_v16, 0.0  ;;  %v564_v18 = vmul.f32 0.01, %v560_v16 }
 0x483   :  { %v565_v19 = vsel %vm563_vm6, %v560_v16, %v564_v18 }
 0x484   :  { %996 = vmatmul.mubr.f32.vlgmr.msra.gmra.mxu1 %v565_v19 }
 0x544   :  { %v655_v21 = vpop.f32.mrf.mxu1 }
 0x545   :  { %v656_v1 = vadd.f32 %v685_v20, %v655_v21 }
 0x546   :  { %v997_v22 = vpop.f32.mrf.mxu1 }
 0x547   :  { %659 = vst [vmem:[#allocation7] sm:$0xff] %v656_v1 }
 0x548   :  { %1063 = shalt.err (!%p1060_p0)
}
 0x549   :  { %669 = dma.vmem_to_hbm [thread:$0]  %s667_s25, 128, %s1278_s5, [#allocation4]  }
 0x54a   :  { %1076 = dma.done.wait [#allocation4], 128  }
 0x54b   :  { %1077 = vsyncadd [#allocation4], 4294967168 }
 0x54c   :  { %673 = vsyncpa [#allocation3], 1 }
 0x54d   :  { %674 = vsyncpa [#allocation6], 1 }
 0x54e   :  { %675 = vsyncpa [#allocation4], 1 }

</bundles_post_ra>
